<compile_context>
chip_gen: v5e
topology: v5e:2x2
jax: 0.10.0
libtpu: 0.0.40
codegen_flags: <defaults>
</compile_context>

<pallas_src>
import math
import jax
import jax.numpy as jnp
from jax import lax
from jax.experimental import pallas as pl
from jax.experimental.pallas import tpu as pltpu


_LN_EPS = 1e-5
_NEG = -1e30          # finite "-inf" for the causal mask (NaN-safe)


def _layer_norm(x, gamma, beta):
    mu = jnp.mean(x, axis=-1, keepdims=True)
    xc = x - mu
    var = jnp.mean(xc * xc, axis=-1, keepdims=True)
    return xc * lax.rsqrt(var + _LN_EPS) * gamma + beta


# ----------------------------------------------------------------------------
# Fused Block kernel:  LN1 -> packed QKV -> batched-heads causal attention ->
# proj(+bias) -> residual -> LN2 -> Linear/ReLU/Linear -> residual.
# grid = (B,)   ("parallel" -> megacore sharding on multi-TC chips)
# ----------------------------------------------------------------------------
def _make_block_kernel(num_heads, head_dim):
    H, D = num_heads, head_dim
    HD = H * D
    scale = 1.0 / math.sqrt(D)

    def kernel(x_ref, g1_ref, b1_ref, wqkvT_ref, wp3_ref, bp_ref,
               g2_ref, b2_ref, w1_ref, c1_ref, w2_ref, c2_ref, o_ref):
        x = x_ref[0]                                        # (T, E) f32
        T = x.shape[0]

        # ---- LN1 + packed (transposed) QKV projection -------------------
        xn = _layer_norm(x, g1_ref[...], b1_ref[...])       # (T, E)
        xnT16 = xn.astype(jnp.bfloat16).T                   # (E, T)
        qkvT = jnp.dot(wqkvT_ref[...], xnT16,
                       preferred_element_type=jnp.float32)  # (3*HD, T)

        # Heads split via leading-dim slices/reshapes (no per-head lane
        # slicing, no per-head casts).  q gets one (0,2,1) transpose so the
        # score matmul is the standard batched (H,T,D)x(H,D,S) form.
        q = jnp.transpose(qkvT[0 * HD:1 * HD].reshape(H, D, T),
                          (0, 2, 1)).astype(jnp.bfloat16)   # (H, T, D)
        kvT16 = qkvT[HD:].astype(jnp.bfloat16)              # one cast for k & v
        kT = kvT16[0 * HD:1 * HD].reshape(H, D, T)          # (H, D, T)
        vT = kvT16[1 * HD:2 * HD].reshape(H, D, T)          # (H, D, T)

        # ---- batched-heads causal attention ------------------------------
        s = lax.dot_general(q, kT, (((2,), (1,)), ((0,), (0,))),
                            preferred_element_type=jnp.float32) * scale  # (H,T,T)
        row = lax.broadcasted_iota(jnp.int32, (H, T, T), 1)
        col = lax.broadcasted_iota(jnp.int32, (H, T, T), 2)
        s = jnp.where(col <= row, s, _NEG)

        m = jnp.max(s, axis=-1, keepdims=True)
        e = jnp.exp(s - m)
        p = e * pl.reciprocal(jnp.sum(e, axis=-1, keepdims=True), approx=True)

        att = lax.dot_general(p.astype(jnp.bfloat16), vT,
                              (((2,), (2,)), ((0,), (0,))),
                              preferred_element_type=jnp.float32)  # (H, T, D)

        # Output projection fused with the head-concat: per-head (T,D)@(D,E)
        # batched over H then summed over heads -> (T, E).  No (T,H*D) relayout.
        yh = lax.dot_general(att.astype(jnp.bfloat16), wp3_ref[...],
                             (((2,), (1,)), ((0,), (0,))),
                             preferred_element_type=jnp.float32)   # (H, T, E)
        x1 = x + jnp.sum(yh, axis=0) + bp_ref[...]                 # residual 1

        # ---- LN2 + FFN + residual (fused; no HBM round trip) -------------
        x2n = _layer_norm(x1, g2_ref[...], b2_ref[...])
        hmid = jnp.dot(x2n.astype(jnp.bfloat16), w1_ref[...],
                       preferred_element_type=jnp.float32) + c1_ref[...]
        hmid = jnp.maximum(hmid, 0.0)                               # ReLU
        y2 = jnp.dot(hmid.astype(jnp.bfloat16), w2_ref[...],
                     preferred_element_type=jnp.float32) + c2_ref[...]
        o_ref[0] = (x1 + y2).astype(o_ref.dtype)

    return kernel


# ----------------------------------------------------------------------------
# One-time weight packing / bf16 casting (call OUTSIDE the jitted forward).
# ----------------------------------------------------------------------------
def pack_block_params(params):
    H, E, D = params["wq"].shape
    HD = H * D
    F = params["w1"].shape[1]

    def rows(w):                       # (H, E, D) -> (H*D, E), head-major rows
        return jnp.transpose(w, (0, 2, 1)).reshape(HD, E)

    return {
        "wqkvT": jnp.concatenate(
            [rows(params["wq"]), rows(params["wk"]), rows(params["wv"])],
            axis=0).astype(jnp.bfloat16),                       # (3*HD, E)
        "wp3": params["w_proj"].reshape(H, D, E).astype(jnp.bfloat16),
        "bp": params["b_proj"].reshape(1, E).astype(jnp.float32),
        "g1": params["ln1_g"].reshape(1, E).astype(jnp.float32),
        "b1": params["ln1_b"].reshape(1, E).astype(jnp.float32),
        "g2": params["ln2_g"].reshape(1, E).astype(jnp.float32),
        "b2": params["ln2_b"].reshape(1, E).astype(jnp.float32),
        "w1": params["w1"].astype(jnp.bfloat16),                # (E, 4E)
        "c1": params["c1"].reshape(1, F).astype(jnp.float32),
        "w2": params["w2"].astype(jnp.bfloat16),                # (4E, E)
        "c2": params["c2"].reshape(1, E).astype(jnp.float32),
    }


# ----------------------------------------------------------------------------
# Full Block forward (dropout = identity).
# ----------------------------------------------------------------------------
def block_forward(x, p, *, num_heads):
    B, T, E = x.shape
    HD = p["wqkvT"].shape[0] // 3
    D = HD // num_heads
    F = p["w1"].shape[1]

    return pl.pallas_call(
        _make_block_kernel(num_heads, D),
        out_shape=jax.ShapeDtypeStruct((B, T, E), jnp.float32),
        grid_spec=pltpu.PrefetchScalarGridSpec(
            num_scalar_prefetch=0,
            grid=(B,),
            in_specs=[
                pl.BlockSpec((1, T, E), lambda b: (b, 0, 0)),          # x
                pl.BlockSpec((1, E), lambda b: (0, 0)),                # ln1 g
                pl.BlockSpec((1, E), lambda b: (0, 0)),                # ln1 b
                pl.BlockSpec((3 * HD, E), lambda b: (0, 0)),           # wqkvT
                pl.BlockSpec((num_heads, D, E), lambda b: (0, 0, 0)),  # wp3
                pl.BlockSpec((1, E), lambda b: (0, 0)),                # b_proj
                pl.BlockSpec((1, E), lambda b: (0, 0)),                # ln2 g
                pl.BlockSpec((1, E), lambda b: (0, 0)),                # ln2 b
                pl.BlockSpec((E, F), lambda b: (0, 0)),                # w1
                pl.BlockSpec((1, F), lambda b: (0, 0)),                # c1
                pl.BlockSpec((F, E), lambda b: (0, 0)),                # w2
                pl.BlockSpec((1, E), lambda b: (0, 0)),                # c2
            ],
            out_specs=pl.BlockSpec((1, T, E), lambda b: (b, 0, 0)),
        ),
        compiler_params=pltpu.CompilerParams(
            dimension_semantics=("parallel",),
            vmem_limit_bytes=48 * 1024 * 1024),
    )(x, p["g1"], p["b1"], p["wqkvT"], p["wp3"], p["bp"],
      p["g2"], p["b2"], p["w1"], p["c1"], p["w2"], p["c2"])


if __name__ == "__main__":
    # Small shapes consistent with the module.
    B, T = 2, 8          # batch, block_size (sequence length)
    E = 32               # embed_dim
    H = 4                # num_heads
    D = E // H           # head_size = 8

    key = jax.random.PRNGKey(0)
    ks = jax.random.split(key, 15)

    x = jax.random.normal(ks[0], (B, T, E), dtype=jnp.float32)

    params = {
        "ln1_g": 1.0 + 0.1 * jax.random.normal(ks[1], (E,), jnp.float32),
        "ln1_b": 0.1 * jax.random.normal(ks[2], (E,), jnp.float32),
        "wq": 0.1 * jax.random.normal(ks[3], (H, E, D), jnp.float32),
        "wk": 0.1 * jax.random.normal(ks[4], (H, E, D), jnp.float32),
        "wv": 0.1 * jax.random.normal(ks[5], (H, E, D), jnp.float32),
        "w_proj": 0.1 * jax.random.normal(ks[6], (H * D, E), jnp.float32),
        "b_proj": 0.1 * jax.random.normal(ks[7], (E,), jnp.float32),
        "ln2_g": 1.0 + 0.1 * jax.random.normal(ks[8], (E,), jnp.float32),
        "ln2_b": 0.1 * jax.random.normal(ks[9], (E,), jnp.float32),
        "w1": 0.1 * jax.random.normal(ks[10], (E, 4 * E), jnp.float32),
        "c1": 0.1 * jax.random.normal(ks[11], (4 * E,), jnp.float32),
        "w2": 0.1 * jax.random.normal(ks[12], (4 * E, E), jnp.float32),
        "c2": 0.1 * jax.random.normal(ks[13], (E,), jnp.float32),
    }

    # Weight packing / bf16 casting happens ONCE, outside the jitted forward.
    packed = pack_block_params(params)

    fwd = jax.jit(block_forward, static_argnames=("num_heads",))
    out = fwd(x, packed, num_heads=H)
    jax.block_until_ready(out)

    # Pure-JAX f32 reference (same math; kernel uses bf16 MXU inputs).
    def ref(x, p):
        def ln(v, g, b):
            mu = v.mean(-1, keepdims=True)
            var = ((v - mu) ** 2).mean(-1, keepdims=True)
            return (v - mu) / jnp.sqrt(var + _LN_EPS) * g + b
        xn = ln(x, p["ln1_g"], p["ln1_b"])
        q = jnp.einsum("bte,hed->bhtd", xn, p["wq"])
        k = jnp.einsum("bte,hed->bhtd", xn, p["wk"])
        v = jnp.einsum("bte,hed->bhtd", xn, p["wv"])
        s = jnp.einsum("bhtd,bhsd->bhts", q, k) / math.sqrt(D)
        mask = jnp.tril(jnp.ones((T, T), bool))
        s = jnp.where(mask, s, -jnp.inf)
        pm = jax.nn.softmax(s, axis=-1)
        att = jnp.einsum("bhts,bhsd->bhtd", pm, v)
        cat = jnp.transpose(att, (0, 2, 1, 3)).reshape(B, T, H * D)
        x1 = x + cat @ p["w_proj"] + p["b_proj"]
        x2n = ln(x1, p["ln2_g"], p["ln2_b"])
        hid = jnp.maximum(x2n @ p["w1"] + p["c1"], 0.0)
        return x1 + hid @ p["w2"] + p["c2"]

    r = ref(x, params)
    max_err = float(jnp.max(jnp.abs(out - r)))
    assert jnp.allclose(out, r, atol=3e-2, rtol=3e-2), \
        f"mismatch vs reference (max abs err {max_err})"

    print("KERNEL_OK")
</pallas_src>

<mosaic_0001>
module attributes {stable_mosaic.version = 11 : i64} {
  func.func @kernel(%arg0: i32, %arg1: memref<1x8x32xf32, #tpu.memory_space<vmem>>, %arg2: memref<1x32xf32, #tpu.memory_space<vmem>>, %arg3: memref<1x32xf32, #tpu.memory_space<vmem>>, %arg4: memref<96x32xbf16, #tpu.memory_space<vmem>>, %arg5: memref<4x8x32xbf16, #tpu.memory_space<vmem>>, %arg6: memref<1x32xf32, #tpu.memory_space<vmem>>, %arg7: memref<1x32xf32, #tpu.memory_space<vmem>>, %arg8: memref<1x32xf32, #tpu.memory_space<vmem>>, %arg9: memref<32x128xbf16, #tpu.memory_space<vmem>>, %arg10: memref<1x128xf32, #tpu.memory_space<vmem>>, %arg11: memref<128x32xbf16, #tpu.memory_space<vmem>>, %arg12: memref<1x32xf32, #tpu.memory_space<vmem>>, %arg13: memref<1x8x32xf32, #tpu.memory_space<vmem>>) attributes {dimension_semantics = [#tpu.dimension_semantics<parallel>], iteration_bounds = array<i64: 2>, scalar_prefetch = 0 : i64, scratch_operands = 0 : i64, tpu.core_type = #tpu.core_type<tc>, window_params = [{transform_indices = @transform_0, window_bounds = array<i64: 1, 8, 32>}, {pipeline_mode = #tpu.pipeline_mode<synchronous>, transform_indices = @transform_1, window_bounds = array<i64: 1, 32>}, {pipeline_mode = #tpu.pipeline_mode<synchronous>, transform_indices = @transform_2, window_bounds = array<i64: 1, 32>}, {pipeline_mode = #tpu.pipeline_mode<synchronous>, transform_indices = @transform_3, window_bounds = array<i64: 96, 32>}, {pipeline_mode = #tpu.pipeline_mode<synchronous>, transform_indices = @transform_4, window_bounds = array<i64: 4, 8, 32>}, {pipeline_mode = #tpu.pipeline_mode<synchronous>, transform_indices = @transform_5, window_bounds = array<i64: 1, 32>}, {pipeline_mode = #tpu.pipeline_mode<synchronous>, transform_indices = @transform_6, window_bounds = array<i64: 1, 32>}, {pipeline_mode = #tpu.pipeline_mode<synchronous>, transform_indices = @transform_7, window_bounds = array<i64: 1, 32>}, {pipeline_mode = #tpu.pipeline_mode<synchronous>, transform_indices = @transform_8, window_bounds = array<i64: 32, 128>}, {pipeline_mode = #tpu.pipeline_mode<synchronous>, transform_indices = @transform_9, window_bounds = array<i64: 1, 128>}, {pipeline_mode = #tpu.pipeline_mode<synchronous>, transform_indices = @transform_10, window_bounds = array<i64: 128, 32>}, {pipeline_mode = #tpu.pipeline_mode<synchronous>, transform_indices = @transform_11, window_bounds = array<i64: 1, 32>}, {transform_indices = @transform_12, window_bounds = array<i64: 1, 8, 32>}]} {
    %c0 = arith.constant 0 : index
    %c0_0 = arith.constant 0 : index
    %c0_1 = arith.constant 0 : index
    %0 = vector.load %arg1[%c0, %c0_0, %c0_1] : memref<1x8x32xf32, #tpu.memory_space<vmem>>, vector<1x8x32xf32>
    %1 = vector.shape_cast %0 : vector<1x8x32xf32> to vector<8x32xf32>
    %c0_2 = arith.constant 0 : index
    %c0_3 = arith.constant 0 : index
    %2 = vector.load %arg2[%c0_2, %c0_3] : memref<1x32xf32, #tpu.memory_space<vmem>>, vector<1x32xf32>
    %c0_4 = arith.constant 0 : index
    %c0_5 = arith.constant 0 : index
    %3 = vector.load %arg3[%c0_4, %c0_5] : memref<1x32xf32, #tpu.memory_space<vmem>>, vector<1x32xf32>
    %cst = arith.constant dense<0.000000e+00> : vector<8xf32>
    %4 = vector.multi_reduction <add>, %1, %cst [1] : vector<8x32xf32> to vector<8xf32>
    %5 = vector.shape_cast %4 : vector<8xf32> to vector<8x1xf32>
    %cst_6 = arith.constant 3.200000e+01 : f32
    %6 = vector.broadcast %cst_6 : f32 to vector<8x1xf32>
    %7 = arith.divf %5, %6 : vector<8x1xf32>
    %8 = vector.broadcast %7 : vector<8x1xf32> to vector<8x32xf32>
    %9 = arith.subf %1, %8 : vector<8x32xf32>
    %10 = arith.mulf %9, %9 : vector<8x32xf32>
    %cst_7 = arith.constant dense<0.000000e+00> : vector<8xf32>
    %11 = vector.multi_reduction <add>, %10, %cst_7 [1] : vector<8x32xf32> to vector<8xf32>
    %12 = vector.shape_cast %11 : vector<8xf32> to vector<8x1xf32>
    %cst_8 = arith.constant 3.200000e+01 : f32
    %13 = vector.broadcast %cst_8 : f32 to vector<8x1xf32>
    %14 = arith.divf %12, %13 : vector<8x1xf32>
    %cst_9 = arith.constant 9.99999974E-6 : f32
    %15 = vector.broadcast %cst_9 : f32 to vector<8x1xf32>
    %16 = arith.addf %14, %15 : vector<8x1xf32>
    %17 = math.rsqrt %16 : vector<8x1xf32>
    %18 = vector.broadcast %17 : vector<8x1xf32> to vector<8x32xf32>
    %19 = arith.mulf %9, %18 : vector<8x32xf32>
    %20 = vector.broadcast %2 : vector<1x32xf32> to vector<8x32xf32>
    %21 = arith.mulf %19, %20 : vector<8x32xf32>
    %22 = vector.broadcast %3 : vector<1x32xf32> to vector<8x32xf32>
    %23 = arith.addf %21, %22 : vector<8x32xf32>
    %24 = arith.truncf %23 : vector<8x32xf32> to vector<8x32xbf16>
    %25 = tpu.transpose %24, [1, 0] : vector<8x32xbf16> -> vector<32x8xbf16>
    %c0_10 = arith.constant 0 : index
    %c0_11 = arith.constant 0 : index
    %26 = vector.load %arg4[%c0_10, %c0_11] : memref<96x32xbf16, #tpu.memory_space<vmem>>, vector<96x32xbf16>
    %cst_12 = arith.constant dense<0.000000e+00> : vector<96x8xf32>
    %27 = tpu.matmul %26, %25, %cst_12 {dimension_numbers = #tpu.dot_dimension_numbers<[1], [0], [0], [1], [0, 0, 1, 1], [], []>} : vector<96x32xbf16>, vector<32x8xbf16>, vector<96x8xf32> -> vector<96x8xf32>
    %28 = vector.extract_strided_slice %27 {offsets = [0, 0], sizes = [32, 8], strides = [1, 1]} : vector<96x8xf32> to vector<32x8xf32>
    %29 = vector.shape_cast %28 : vector<32x8xf32> to vector<4x8x8xf32>
    %30 = tpu.transpose %29, [0, 2, 1] : vector<4x8x8xf32> -> vector<4x8x8xf32>
    %31 = arith.truncf %30 : vector<4x8x8xf32> to vector<4x8x8xbf16>
    %32 = vector.extract_strided_slice %27 {offsets = [32, 0], sizes = [64, 8], strides = [1, 1]} : vector<96x8xf32> to vector<64x8xf32>
    %33 = arith.truncf %32 : vector<64x8xf32> to vector<64x8xbf16>
    %34 = vector.extract_strided_slice %33 {offsets = [0, 0], sizes = [32, 8], strides = [1, 1]} : vector<64x8xbf16> to vector<32x8xbf16>
    %35 = vector.shape_cast %34 : vector<32x8xbf16> to vector<4x8x8xbf16>
    %36 = vector.extract_strided_slice %33 {offsets = [32, 0], sizes = [32, 8], strides = [1, 1]} : vector<64x8xbf16> to vector<32x8xbf16>
    %37 = vector.shape_cast %36 : vector<32x8xbf16> to vector<4x8x8xbf16>
    %cst_13 = arith.constant dense<0.000000e+00> : vector<4x8x8xf32>
    %38 = tpu.matmul %31, %35, %cst_13 {dimension_numbers = #tpu.dot_dimension_numbers<[2], [1], [1], [2], [0, 0, 0, 1, 1, 2], [0], [0]>} : vector<4x8x8xbf16>, vector<4x8x8xbf16>, vector<4x8x8xf32> -> vector<4x8x8xf32>
    %cst_14 = arith.constant 0.353553385 : f32
    %39 = vector.broadcast %cst_14 : f32 to vector<4x8x8xf32>
    %40 = arith.mulf %38, %39 : vector<4x8x8xf32>
    %41 = tpu.iota {dimensions = array<i32: 1>} : vector<4x8x8xi32>
    %42 = tpu.iota {dimensions = array<i32: 2>} : vector<4x8x8xi32>
    %43 = arith.cmpi sle, %42, %41 : vector<4x8x8xi32>
    %cst_15 = arith.constant -1.000000e+30 : f32
    %44 = vector.broadcast %cst_15 : f32 to vector<4x8x8xf32>
    %45 = arith.select %43, %40, %44 : vector<4x8x8xi1>, vector<4x8x8xf32>
    %cst_16 = arith.constant dense<0xFF800000> : vector<4x8xf32>
    %46 = vector.multi_reduction <maximumf>, %45, %cst_16 [2] : vector<4x8x8xf32> to vector<4x8xf32>
    %47 = vector.shape_cast %46 : vector<4x8xf32> to vector<4x8x1xf32>
    %48 = vector.broadcast %47 : vector<4x8x1xf32> to vector<4x8x8xf32>
    %49 = arith.subf %45, %48 : vector<4x8x8xf32>
    %50 = math.exp %49 : vector<4x8x8xf32>
    %cst_17 = arith.constant dense<0.000000e+00> : vector<4x8xf32>
    %51 = vector.multi_reduction <add>, %50, %cst_17 [2] : vector<4x8x8xf32> to vector<4x8xf32>
    %52 = vector.shape_cast %51 : vector<4x8xf32> to vector<4x8x1xf32>
    %53 = tpu.reciprocal %52 {approx = true} : vector<4x8x1xf32> -> vector<4x8x1xf32>
    %54 = vector.broadcast %53 : vector<4x8x1xf32> to vector<4x8x8xf32>
    %55 = arith.mulf %50, %54 : vector<4x8x8xf32>
    %56 = arith.truncf %55 : vector<4x8x8xf32> to vector<4x8x8xbf16>
    %cst_18 = arith.constant dense<0.000000e+00> : vector<4x8x8xf32>
    %57 = tpu.matmul %56, %37, %cst_18 {dimension_numbers = #tpu.dot_dimension_numbers<[2], [2], [1], [1], [0, 0, 0, 1, 1, 1], [0], [0]>} : vector<4x8x8xbf16>, vector<4x8x8xbf16>, vector<4x8x8xf32> -> vector<4x8x8xf32>
    %58 = arith.truncf %57 : vector<4x8x8xf32> to vector<4x8x8xbf16>
    %c0_19 = arith.constant 0 : index
    %c0_20 = arith.constant 0 : index
    %c0_21 = arith.constant 0 : index
    %59 = vector.load %arg5[%c0_19, %c0_20, %c0_21] : memref<4x8x32xbf16, #tpu.memory_space<vmem>>, vector<4x8x32xbf16>
    %cst_22 = arith.constant dense<0.000000e+00> : vector<4x8x32xf32>
    %60 = tpu.matmul %58, %59, %cst_22 {dimension_numbers = #tpu.dot_dimension_numbers<[2], [1], [1], [2], [0, 0, 0, 1, 1, 2], [0], [0]>} : vector<4x8x8xbf16>, vector<4x8x32xbf16>, vector<4x8x32xf32> -> vector<4x8x32xf32>
    %cst_23 = arith.constant dense<0.000000e+00> : vector<8x32xf32>
    %61 = vector.multi_reduction <add>, %60, %cst_23 [0] : vector<4x8x32xf32> to vector<8x32xf32>
    %62 = arith.addf %1, %61 : vector<8x32xf32>
    %c0_24 = arith.constant 0 : index
    %c0_25 = arith.constant 0 : index
    %63 = vector.load %arg6[%c0_24, %c0_25] : memref<1x32xf32, #tpu.memory_space<vmem>>, vector<1x32xf32>
    %64 = vector.broadcast %63 : vector<1x32xf32> to vector<8x32xf32>
    %65 = arith.addf %62, %64 : vector<8x32xf32>
    %c0_26 = arith.constant 0 : index
    %c0_27 = arith.constant 0 : index
    %66 = vector.load %arg7[%c0_26, %c0_27] : memref<1x32xf32, #tpu.memory_space<vmem>>, vector<1x32xf32>
    %c0_28 = arith.constant 0 : index
    %c0_29 = arith.constant 0 : index
    %67 = vector.load %arg8[%c0_28, %c0_29] : memref<1x32xf32, #tpu.memory_space<vmem>>, vector<1x32xf32>
    %cst_30 = arith.constant dense<0.000000e+00> : vector<8xf32>
    %68 = vector.multi_reduction <add>, %65, %cst_30 [1] : vector<8x32xf32> to vector<8xf32>
    %69 = vector.shape_cast %68 : vector<8xf32> to vector<8x1xf32>
    %cst_31 = arith.constant 3.200000e+01 : f32
    %70 = vector.broadcast %cst_31 : f32 to vector<8x1xf32>
    %71 = arith.divf %69, %70 : vector<8x1xf32>
    %72 = vector.broadcast %71 : vector<8x1xf32> to vector<8x32xf32>
    %73 = arith.subf %65, %72 : vector<8x32xf32>
    %74 = arith.mulf %73, %73 : vector<8x32xf32>
    %cst_32 = arith.constant dense<0.000000e+00> : vector<8xf32>
    %75 = vector.multi_reduction <add>, %74, %cst_32 [1] : vector<8x32xf32> to vector<8xf32>
    %76 = vector.shape_cast %75 : vector<8xf32> to vector<8x1xf32>
    %cst_33 = arith.constant 3.200000e+01 : f32
    %77 = vector.broadcast %cst_33 : f32 to vector<8x1xf32>
    %78 = arith.divf %76, %77 : vector<8x1xf32>
    %cst_34 = arith.constant 9.99999974E-6 : f32
    %79 = vector.broadcast %cst_34 : f32 to vector<8x1xf32>
    %80 = arith.addf %78, %79 : vector<8x1xf32>
    %81 = math.rsqrt %80 : vector<8x1xf32>
    %82 = vector.broadcast %81 : vector<8x1xf32> to vector<8x32xf32>
    %83 = arith.mulf %73, %82 : vector<8x32xf32>
    %84 = vector.broadcast %66 : vector<1x32xf32> to vector<8x32xf32>
    %85 = arith.mulf %83, %84 : vector<8x32xf32>
    %86 = vector.broadcast %67 : vector<1x32xf32> to vector<8x32xf32>
    %87 = arith.addf %85, %86 : vector<8x32xf32>
    %88 = arith.truncf %87 : vector<8x32xf32> to vector<8x32xbf16>
    %c0_35 = arith.constant 0 : index
    %c0_36 = arith.constant 0 : index
    %89 = vector.load %arg9[%c0_35, %c0_36] : memref<32x128xbf16, #tpu.memory_space<vmem>>, vector<32x128xbf16>
    %cst_37 = arith.constant dense<0.000000e+00> : vector<8x128xf32>
    %90 = tpu.matmul %88, %89, %cst_37 {dimension_numbers = #tpu.dot_dimension_numbers<[1], [0], [0], [1], [0, 0, 1, 1], [], []>} : vector<8x32xbf16>, vector<32x128xbf16>, vector<8x128xf32> -> vector<8x128xf32>
    %c0_38 = arith.constant 0 : index
    %c0_39 = arith.constant 0 : index
    %91 = vector.load %arg10[%c0_38, %c0_39] : memref<1x128xf32, #tpu.memory_space<vmem>>, vector<1x128xf32>
    %92 = vector.broadcast %91 : vector<1x128xf32> to vector<8x128xf32>
    %93 = arith.addf %90, %92 : vector<8x128xf32>
    %cst_40 = arith.constant 0.000000e+00 : f32
    %94 = vector.broadcast %cst_40 : f32 to vector<8x128xf32>
    %95 = arith.maximumf %93, %94 : vector<8x128xf32>
    %96 = arith.truncf %95 : vector<8x128xf32> to vector<8x128xbf16>
    %c0_41 = arith.constant 0 : index
    %c0_42 = arith.constant 0 : index
    %97 = vector.load %arg11[%c0_41, %c0_42] : memref<128x32xbf16, #tpu.memory_space<vmem>>, vector<128x32xbf16>
    %cst_43 = arith.constant dense<0.000000e+00> : vector<8x32xf32>
    %98 = tpu.matmul %96, %97, %cst_43 {dimension_numbers = #tpu.dot_dimension_numbers<[1], [0], [0], [1], [0, 0, 1, 1], [], []>} : vector<8x128xbf16>, vector<128x32xbf16>, vector<8x32xf32> -> vector<8x32xf32>
    %c0_44 = arith.constant 0 : index
    %c0_45 = arith.constant 0 : index
    %99 = vector.load %arg12[%c0_44, %c0_45] : memref<1x32xf32, #tpu.memory_space<vmem>>, vector<1x32xf32>
    %100 = vector.broadcast %99 : vector<1x32xf32> to vector<8x32xf32>
    %101 = arith.addf %98, %100 : vector<8x32xf32>
    %102 = arith.addf %65, %101 : vector<8x32xf32>
    %c0_46 = arith.constant 0 : index
    %c0_47 = arith.constant 0 : index
    %c0_48 = arith.constant 0 : index
    %103 = vector.load %arg13[%c0_46, %c0_47, %c0_48] : memref<1x8x32xf32, #tpu.memory_space<vmem>>, vector<1x8x32xf32>
    %104 = vector.shape_cast %103 : vector<1x8x32xf32> to vector<8x32xf32>
    %105 = vector.shape_cast %102 : vector<8x32xf32> to vector<1x8x32xf32>
    tpu.vector_store %arg13[%c0_46, %c0_47, %c0_48], %105 {strides = array<i32>} : memref<1x8x32xf32, #tpu.memory_space<vmem>>, vector<1x8x32xf32>,
    return
  }
  func.func @transform_0(%arg0: i32) -> (i32, i32, i32) {
    %c0_i32 = arith.constant 0 : i32
    %c0_i32_0 = arith.constant 0 : i32
    %c0_i32_1 = arith.constant 0 : i32
    return %arg0, %c0_i32, %c0_i32_0 : i32, i32, i32
  }
  func.func @transform_1(%arg0: i32) -> (i32, i32) {
    %c0_i32 = arith.constant 0 : i32
    %c0_i32_0 = arith.constant 0 : i32
    %c0_i32_1 = arith.constant 0 : i32
    return %c0_i32, %c0_i32_0 : i32, i32
  }
  func.func @transform_2(%arg0: i32) -> (i32, i32) {
    %c0_i32 = arith.constant 0 : i32
    %c0_i32_0 = arith.constant 0 : i32
    %c0_i32_1 = arith.constant 0 : i32
    return %c0_i32, %c0_i32_0 : i32, i32
  }
  func.func @transform_3(%arg0: i32) -> (i32, i32) {
    %c0_i32 = arith.constant 0 : i32
    %c0_i32_0 = arith.constant 0 : i32
    %c0_i32_1 = arith.constant 0 : i32
    return %c0_i32, %c0_i32_0 : i32, i32
  }
  func.func @transform_4(%arg0: i32) -> (i32, i32, i32) {
    %c0_i32 = arith.constant 0 : i32
    %c0_i32_0 = arith.constant 0 : i32
    %c0_i32_1 = arith.constant 0 : i32
    %c0_i32_2 = arith.constant 0 : i32
    return %c0_i32, %c0_i32_0, %c0_i32_1 : i32, i32, i32
  }
  func.func @transform_5(%arg0: i32) -> (i32, i32) {
    %c0_i32 = arith.constant 0 : i32
    %c0_i32_0 = arith.constant 0 : i32
    %c0_i32_1 = arith.constant 0 : i32
    return %c0_i32, %c0_i32_0 : i32, i32
  }
  func.func @transform_6(%arg0: i32) -> (i32, i32) {
    %c0_i32 = arith.constant 0 : i32
    %c0_i32_0 = arith.constant 0 : i32
    %c0_i32_1 = arith.constant 0 : i32
    return %c0_i32, %c0_i32_0 : i32, i32
  }
  func.func @transform_7(%arg0: i32) -> (i32, i32) {
    %c0_i32 = arith.constant 0 : i32
    %c0_i32_0 = arith.constant 0 : i32
    %c0_i32_1 = arith.constant 0 : i32
    return %c0_i32, %c0_i32_0 : i32, i32
  }
  func.func @transform_8(%arg0: i32) -> (i32, i32) {
    %c0_i32 = arith.constant 0 : i32
    %c0_i32_0 = arith.constant 0 : i32
    %c0_i32_1 = arith.constant 0 : i32
    return %c0_i32, %c0_i32_0 : i32, i32
  }
  func.func @transform_9(%arg0: i32) -> (i32, i32) {
    %c0_i32 = arith.constant 0 : i32
    %c0_i32_0 = arith.constant 0 : i32
    %c0_i32_1 = arith.constant 0 : i32
    return %c0_i32, %c0_i32_0 : i32, i32
  }
  func.func @transform_10(%arg0: i32) -> (i32, i32) {
    %c0_i32 = arith.constant 0 : i32
    %c0_i32_0 = arith.constant 0 : i32
    %c0_i32_1 = arith.constant 0 : i32
    return %c0_i32, %c0_i32_0 : i32, i32
  }
  func.func @transform_11(%arg0: i32) -> (i32, i32) {
    %c0_i32 = arith.constant 0 : i32
    %c0_i32_0 = arith.constant 0 : i32
    %c0_i32_1 = arith.constant 0 : i32
    return %c0_i32, %c0_i32_0 : i32, i32
  }
  func.func @transform_12(%arg0: i32) -> (i32, i32, i32) {
    %c0_i32 = arith.constant 0 : i32
    %c0_i32_0 = arith.constant 0 : i32
    %c0_i32_1 = arith.constant 0 : i32
    return %arg0, %c0_i32, %c0_i32_0 : i32, i32, i32
  }
}

</mosaic_0001>

<bundles_post_ra>
// kernel: block_forward.1
= control target key start
LH: loop header
LB: loop body
LE: loop exit
PB: predicated region body
PF: predicated region fallthrough
CT: control target
= control target key end

     0   :  { %s1786_s0 = inlined_call_operand.vmem [shape: f32[2,8,32], index: 0, kind: input, shape index: {}]   ;;  %s1787_s1 = inlined_call_operand.vmem [shape: f32[1,32], index: 1, kind: input, shape index: {}]   ;;  %s1788_s2 = inlined_call_operand.vmem [shape: f32[1,32], index: 2, kind: input, shape index: {}]   ;;  %s1789_s3 = inlined_call_operand.vmem [shape: bf16[96,32], index: 3, kind: input, shape index: {}]   ;;  %s1790_s4 = inlined_call_operand.vmem [shape: bf16[4,8,32], index: 4, kind: input, shape index: {}]   ;;  %s1791_s5 = inlined_call_operand.vmem [shape: f32[1,32], index: 5, kind: input, shape index: {}]   ;;  %s1792_s6 = inlined_call_operand.vmem [shape: f32[1,32], index: 6, kind: input, shape index: {}]   ;;  %s1793_s7 = inlined_call_operand.vmem [shape: f32[1,32], index: 7, kind: input, shape index: {}]   ;;  %s1794_s8 = inlined_call_operand.vmem [shape: bf16[32,128], index: 8, kind: input, shape index: {}]   ;;  %s1795_s9 = inlined_call_operand.vmem [shape: f32[1,128], index: 9, kind: input, shape index: {}]   ;;  %s1796_s10 = inlined_call_operand.vmem [shape: bf16[128,32], index: 10, kind: input, shape index: {}]   ;;  %s1797_s11 = inlined_call_operand.vmem [shape: f32[1,32], index: 11, kind: input, shape index: {}]   ;;  %s1798_s12 = inlined_call_operand.hbm [shape: f32[2,8,32], index: 12, kind: output, shape index: {}]  }
   0x1   :  { %1799 = sst [smem:[#allocation5_spill]] %s1786_s0 }
   0x2   :  { %1800 = sst [smem:[#allocation6_spill]] %s1787_s1 }
   0x3   :  { %1801 = sst [smem:[#allocation7_spill]] %s1788_s2 }
   0x4   :  { %17 = vsyncpa [#allocation3], 0 }
   0x5   :  { %19 = vsyncpa [#allocation3 + $0x1], 0  ;;  %s1551_s21 = smov 0   ;;  %s1553_s22 = smov 0  }
   0x6   :  { %s1555_s23 = smov 0   ;;  %s1557_s24 = smov 0  }
   0x7 LB: > { %s1572_s25 = sadd.s32 4294967295, %s1483_s24   ;;  %s1235_s26 = sadd.s32 4294967294, %s1483_s24   ;;  %s1483_s24 = sphi %s1557_s24, %s1810_s24   ;;  %s1479_s23 = sphi %s1555_s23, %s1809_s23   ;;  %s1475_s22 = sphi %s1553_s22, %s1808_s22   ;;  %s1471_s21 = sphi %s1551_s21, %s1807_s21  }
   0x8   : > { %s1576_s27 = sadd.s32 1, %s1483_s24   ;;  %s289_s28 = sadd.s32 1, %s1479_s23 }
   0x9   : > { %s286_s29 = ssub.s32 %s1483_s24, %s1576_s27  ;;  %p299_p0 = scmp.ne.s32.totalorder %s1479_s23, %s1475_s22 }
   0xa   : > { %p287_p1 = scmp.eq.s32.totalorder %s286_s29, 0  ;;  %p300_p2 = scmp.eq.s32.totalorder %s1572_s25, 1 }
   0xb   : > { %p305_p3 = scmp.ne.s32.totalorder %s1475_s22, %s1471_s21  ;;  %p306_p4 = scmp.eq.s32.totalorder %s1235_s26, 1 }
   0xc   : > { %s1587_s30 = scalar_select %p287_p1, %s1479_s23, %s289_s28  }
   0xd   : > { %p1589_p5 = por %p300_p2, %p299_p0  ;;  %p1593_p6 = por %p306_p4, %p305_p3 }
   0xe   : > { %p1238_p7 = scmp.ge.s32.totalorder %s1483_s24, 1  ;;  %p364_p8 = scmp.lt.s32.totalorder %s1483_s24, 3 }
  0x10   : > { %p365_p9 = pnand %p1238_p7, %p364_p8 }
  0x11   : > { %p405_p10 = scmp.lt.s32.totalorder (!%p365_p9), %s1572_s25, 1  ;;  %s1804_s0 = sld [smem:[#allocation5_spill]] (!%p365_p9) }
  0x12   : > { %368 = sbr.rel (%p365_p9) target bundleno = 1837 (0x72d), region = 68  ;;  %s1805_s1 = sld [smem:[#allocation6_spill]] (!%p365_p9) }
  0x13   : > { %s1806_s2 = sld [smem:[#allocation7_spill]] (!%p365_p9)  ;;  %s402_s18 = sand.u32 (!%p365_p9), 1, %s1475_s22  }
  0x14   : > { %s1325_s20 = sshll.u32 (!%p365_p9), %s1572_s25, 3 }
  0x17   : > { %s406_s15 = scalar_select %p405_p10, %s1572_s25, 1  ;;  %vm413_vm0 = vcmask 261120   ;;  %v1485_v2 = vmov 32.0   ;;  %v1328_v31 = vld [vmem:[%s1789_s3] sm:$0xff]  ;;  %v1329_v32 = vld [vmem:[%s1789_s3 + $0x8] sm:$0xff]  ;;  %v1330_v33 = vld [vmem:[%s1789_s3 + $0x10] sm:$0xff]  ;;  %v776_v61 = vlaneseq }
  0x18   : > { %1399 = vrcp.f32 %v1485_v2  ;;  %v1392_v23 = vld [vmem:[%s1805_s1] ss:$0 sm:$0xff]  ;;  %v1331_v35 = vld [vmem:[%s1789_s3 + $0x18] sm:$0xff]  ;;  %vm698_vm5 = vcmask 1043456   ;;  %vm694_vm6 = vcmask 64512   ;;  %s1161_s25 = scalar_lea.sflag [#allocation3], %s402_s18 }
  0x19   : > { %s1240_s16 = sshll.u32 %s406_s15, 3  ;;  %v1393_v26 = vld [vmem:[%s1806_s2] ss:$0 sm:$0xff]  ;;  %v777_v62 = vshrl.u32 %v776_v61, 7  ;;  %v779_v63 = vand.u32 127, %v776_v61 }
  0x1a   : > { %s408_s19 = scalar_lea.vmem %s1804_s0, %s1240_s16  ;;  %s1171_s0 = scalar_lea.hbm %s1798_s12, %s1325_s20 }
  0x1b   : > { %v1604_v0 = vld [vmem:[%s408_s19] sm:$0xff]  ;;  %vm780_vm7 = vcmp.le.s32.totalorder %v779_v63, %v777_v62  ;;  %s1239_s19 = sshll.u32 %s402_s18, 3  ;;  %s1175_s1 = sshll.u32 %s1171_s0, 4  ;;  %s1176_s1 = int_to_ptr.hbm [resolvable:$true] %s1175_s1 }
  0x1c   : > { %v414_v1 = vsel %vm413_vm0, %v1604_v0, 0.0  ;;  %s404_s16 = scalar_lea.vmem [#allocation2], %s1239_s19  ;;  %s1435_s2 = sshra.s32 %s1176_s1, 4  ;;  %s1436_s2 = int_to_ptr.hbm [resolvable:$true] %s1435_s2 }
  0x1d   : > { %415 = vadd.xlane.f32.xlu0 %v414_v1  ;;  %s1173_s17 = sshll.u32 %s404_s16, 4  ;;  %s1437_s26 = scalar_lea.hbm %s1436_s2, 8  ;;  %s1174_s17 = int_to_ptr.vmem [resolvable:$true] %s1173_s17 }
  0x1e   : > { %v1400_v3 = vpop.eup %1399  ;;  %p1438_p11 = scmp.ne.s32.totalorder %s1436_s2, %s1437_s26  ;;  %s1441_s19 = scalar_lea.hbm %s1798_s12, 16 }
  0x1f   : > { %v418_v4 = vmul.f32 32.0, %v1400_v3  ;;  %vm422_vm1 = vweird.f32 %v1400_v3  ;;  %p1442_p0 = scmp.lt.s32.totalorder %s1436_s2, %s1798_s12  ;;  %p1443_p1 = scmp.lt.s32.totalorder %s1441_s19, %s1437_s26 }
  0x20   : > { %p1439_p12 = pnand %p1438_p11, %p1589_p5 }
  0x21   : > { %v419_v5 = vsub.f32 1.0, %v418_v4  ;;  %p1444_p2 = por %p1443_p1, %p1442_p0 }
  0x22   : > { %p1440_p13 = pneg %p1439_p12 }
  0x23   : > { %v420_v6 = vmul.f32 %v1400_v3, %v419_v5 }
  0x24   : > { %p1445_p3 = pnand %p1444_p2, %p1440_p13 }
  0x25   : > { %v421_v7 = vadd.f32 %v1400_v3, %v420_v6 }
  0x27   : > { %v1608_v8 = vsel %vm422_vm1, %v1400_v3, %v421_v7 }
  0x90   : > { %v416_v9 = vpop.xlane.xlu0 %415 }
  0x91   : > { %v424_v10 = vmul.f32 %v1608_v8, %v416_v9 }
  0x93   : > { %v425_v11 = vsub.f32 %v1604_v0, %v424_v10 }
  0x95   : > { %v426_v12 = vmul.f32 %v425_v11, %v425_v11 }
  0x97   : > { %v427_v13 = vsel %vm413_vm0, %v426_v12, 0.0 }
  0x98   : > { %428 = vadd.xlane.f32.xlu0 %v427_v13 }
 0x10b   : > { %v429_v14 = vpop.xlane.xlu0 %428 }
 0x10c   : > { %v430_v15 = vmul.f32 %v429_v14, %v1608_v8 }
 0x10e   : > { %v431_v16 = vadd.f32 1e-05, %v430_v15 }
 0x110   : > { %1401 = vrsqrt.f32 %v431_v16  ;;  %vm438_vm3 = vweird.f32 %v431_v16 }
 0x116   : > { %v1402_v17 = vpop.eup %1401 }
 0x117   : > { %v433_v18 = vmul.f32 %v1402_v17, %v431_v16  ;;  %vm439_vm2 = vweird.f32 %v1402_v17 }
 0x118   : > { %vm440_vm4 = vmor %vm438_vm3, %vm439_vm2 }
 0x119   : > { %v434_v19 = vmul.f32 %v1402_v17, %v433_v18 }
 0x11b   : > { %v435_v20 = vmul.f32 0.5, %v434_v19 }
 0x11d   : > { %v436_v21 = vsub.f32 1.5, %v435_v20 }
 0x11f   : > { %v437_v22 = vmul.f32 %v1402_v17, %v436_v21 }
 0x121   : > { %v441_v24 = vsel %vm440_vm4, %v1402_v17, %v437_v22  ;;  %v1332_v22 = vld [vmem:[%s1789_s3 + $0x20] sm:$0xff] }
 0x122   : > { %v442_v25 = vmul.f32 %v441_v24, %v425_v11 }
 0x124   : > { %v446_v27 = vmul.f32 %v1392_v23, %v442_v25  ;;  %v1333_v23 = vld [vmem:[%s1789_s3 + $0x28] sm:$0xff] }
 0x126   : > { %v450_v28 = vadd.f32 %v1393_v26, %v446_v27 }
 0x128   : > { %v451_v29 = vpack.c.bf16 %v450_v28, %v450_v28 }
 0x12a   : > { %v513_v30 = vsel %vm413_vm0, %v451_v29, 0 }
 0x12b   : > { %522 = vmatpush.bf16.xpose.msra.mxu0 %v513_v30 }
 0x132   : > { %1265 = vmatmul.msk.bf16.vlgmr.msra.gmra.mxu0 %vm413_vm0, %v1328_v31 }
 0x142   : > { %1266 = vmatmul.msk.bf16.gmra.mxu0 %vm413_vm0, %v1329_v32 }
 0x152   : > { %1267 = vmatmul.msk.bf16.gmra.mxu0 %vm413_vm0, %v1330_v33 }
 0x162   : > { %1268 = vmatmul.msk.bf16.gmra.mxu0 %vm413_vm0, %v1331_v35 }
 0x172   : > { %1269 = vmatmul.msk.bf16.gmra.mxu0 %vm413_vm0, %v1332_v22 }
 0x182   : > { %1270 = vmatmul.msk.bf16.gmra.mxu0 %vm413_vm0, %v1333_v23 }
 0x1af   : > { %v524_v34 = vpop.f32.mrf.mxu0 }
 0x1b0   : > { %554 = vxpose.xlu1.b32.start.end [1/1] (short) (narrow) %v524_v34, 8 }
 0x1b7   : > { %v526_v36 = vpop.f32.mrf.mxu0 }
 0x1bf   : > { %v529_v37 = vpop.f32.mrf.mxu0 }
 0x1c0   : > { %v1385_v38 = vpack.i.bf16 %v529_v37, %v526_v36 }
 0x1c2   : > { %1386 = vxpose.xlu1.b32.start.end [1/1] (short) (narrow) %v1385_v38, 8 }
 0x1c7   : > { %v531_v39 = vpop.f32.mrf.mxu0 }
 0x1c8   : > { %650 = vxpose.xlu2.b32.start.end [1/1] (short) (narrow) %v531_v39, 8 }
 0x1cf   : > { %v534_v40 = vpop.f32.mrf.mxu0 }
 0x1d0   : > { %v686_v41 = vpack.c.bf16 %v534_v40, %v534_v40 }
 0x1d2   : > { %v700_v42 = vsel %vm698_vm5, %v686_v41, 0 }
 0x1d3   : > { %709 = vmatpush.bf16.msra.mxu1 %v700_v42 }
 0x1d7   : > { %v536_v43 = vpop.f32.mrf.mxu0 }
 0x1d8   : > { %v687_v44 = vpack.c.bf16 %v536_v43, %v536_v43 }
 0x1da   : > { %v719_v45 = vsel %vm698_vm5, %v687_v44, 0 }
 0x1db   : > { %728 = vmatpush.bf16.msra.mxu2 %v719_v45 }
 0x1df   : > { %v539_v46 = vpop.f32.mrf.mxu0 }
 0x1e0   : > { %v688_v47 = vpack.c.bf16 %v539_v46, %v539_v46 }
 0x1e2   : > { %v738_v48 = vsel %vm698_vm5, %v688_v47, 0 }
 0x1e3   : > { %747 = vmatpush.bf16.msra.mxu3 %v738_v48 }
 0x1e7   : > { %v541_v49 = vpop.f32.mrf.mxu0 }
 0x1e8   : > { %v689_v50 = vpack.c.bf16 %v541_v49, %v541_v49 }
 0x1ea   : > { %v757_v51 = vsel %vm698_vm5, %v689_v50, 0 }
 0x1eb   : > { %766 = vmatpush.bf16.msrb.mxu1 %v757_v51 }
 0x1ef   : > { %v544_v44 = vpop.f32.mrf.mxu0 }
 0x1f0   : > { %v690_v45 = vpack.c.bf16 %v544_v44, %v544_v44 }
 0x1f2   : > { %v837_v46 = vsel %vm694_vm6, %v690_v45, 0 }
 0x1f3   : > { %846 = vmatpush.bf16.xpose.msrb.mxu2 %v837_v46 }
 0x1f7   : > { %v546_v47 = vpop.f32.mrf.mxu0 }
 0x1f8   : > { %v691_v48 = vpack.c.bf16 %v546_v47, %v546_v47 }
 0x1fa   : > { %v856_v49 = vsel %vm694_vm6, %v691_v48, 0 }
 0x1fb   : > { %865 = vmatpush.bf16.xpose.msrb.mxu3 %v856_v49 }
 0x1ff   : > { %v549_v50 = vpop.f32.mrf.mxu0 }
 0x200   : > { %v692_v51 = vpack.c.bf16 %v549_v50, %v549_v50 }
 0x254   : > { %v570_v52 = vpop.trf.xlu1 }
 0x255   : > { %v682_v53 = vpack.c.bf16 %v570_v52, %v570_v52  ;;  %v875_v52 = vsel %vm694_vm6, %v692_v51, 0 }
 0x257   : > { %1271 = vmatmul.msk.bf16.vlgmr.msra.gmra.mxu1 %vm694_vm6, %v682_v53  ;;  %v551_v53 = vpop.f32.mrf.mxu0 }
 0x258   : > { %884 = vmatpush.bf16.xpose.msra.mxu1 %v875_v52 }
 0x261   : > { %v666_v54 = vpop.trf.xlu2 }
 0x262   : > { %v685_v55 = vpack.c.bf16 %v666_v54, %v666_v54  ;;  %v693_v54 = vpack.c.bf16 %v551_v53, %v551_v53 }
 0x266   : > { %v1387_v56 = vpop.trf.xlu1 }
 0x267   : > { %1274 = vmatmul.msk.bf16.vlgmr.msrb.gmra.mxu1 %vm694_vm6, %v685_v55  ;;  %v1388_v57 = vunpack.i.l.bf16 %v1387_v56  ;;  %v1391_v58 = vunpack.i.h.bf16 %v1387_v56  ;;  %v894_v55 = vsel %vm694_vm6, %v693_v54, 0  ;;  %v1334_v54 = vld [vmem:[%s1794_s8] sm:$0xff] }
 0x269   : > { %v683_v59 = vpack.c.bf16 %v1388_v57, %v1388_v57  ;;  %v684_v60 = vpack.c.bf16 %v1391_v58, %v1391_v58 }
 0x26b   : > { %1272 = vmatmul.msk.bf16.vlgmr.msra.gmra.mxu2 %vm694_vm6, %v683_v59  ;;  %1273 = vmatmul.msk.bf16.vlgmr.msra.gmra.mxu3 %vm694_vm6, %v684_v60 }
 0x26c   : > { %903 = vmatpush.bf16.xpose.msra.mxu2 %v894_v55  ;;  %v1343_v55 = vld [vmem:[%s1796_s10 + $0x38] sm:$0xff] }
 0x2d4   : > { %v711_v1 = vpop.f32.mrf.mxu1 }
 0x2d5   : > { %v772_v2 = vmul.f32 0.35355338, %v711_v1 }
 0x2d7   : > { %v781_v3 = vsel %vm780_vm7, %v772_v2, -1e+30 }
 0x2d8   : > { %v785_v4 = vsel %vm694_vm6, %v781_v3, -inf }
 0x2d9   : > { %786 = vmax.xlane.f32.xlu2 %v785_v4 }
 0x2dc   : > { %v713_v5 = vpop.f32.mrf.mxu1 }
 0x2e4   : > { %v768_v6 = vpop.f32.mrf.mxu1 }
 0x2e5   : > { %v775_v7 = vmul.f32 0.35355338, %v768_v6 }
 0x2e7   : > { %v784_v9 = vsel %vm780_vm7, %v775_v7, -1e+30 }
 0x2e8   : > { %v794_v10 = vsel %vm694_vm6, %v784_v9, -inf }
 0x2e9   : > { %795 = vmax.xlane.f32.xlu0 %v794_v10  ;;  %v913_v10 = vld [vmem:[%s1790_s4] sm:$0xf] }
 0x2ec   : > { %v770_v11 = vpop.f32.mrf.mxu1 }
 0x2ed   : > { %v921_v11 = vsel %vm698_vm5, %v913_v10, 0  ;;  %v1396_v10 = vld [vmem:[%s1793_s7] ss:$0 sm:$0xff] }
 0x2ee   : > { %v730_v12 = vpop.f32.mrf.mxu2  ;;  %v749_v13 = vpop.f32.mrf.mxu3  ;;  %930 = vmatpush.bf16.msra.mxu3 %v921_v11 }
 0x2ef   : > { %v773_v14 = vmul.f32 0.35355338, %v730_v12  ;;  %v774_v15 = vmul.f32 0.35355338, %v749_v13  ;;  %v915_v12 = vld [vmem:[%s1790_s4 + $0x8] sm:$0xf] }
 0x2f0   : > { %v916_v13 = vld [vmem:[%s1790_s4 + $0xc] sm:$0xf] }
 0x2f1   : > { %v782_v16 = vsel %vm780_vm7, %v773_v14, -1e+30  ;;  %v783_v17 = vsel %vm780_vm7, %v774_v15, -1e+30  ;;  %v959_v14 = vsel %vm698_vm5, %v915_v12, 0  ;;  %v978_v15 = vsel %vm698_vm5, %v916_v13, 0 }
 0x2f2   : > { %v788_v18 = vsel %vm694_vm6, %v782_v16, -inf  ;;  %v791_v19 = vsel %vm694_vm6, %v783_v17, -inf }
 0x2f3   : > { %789 = vmax.xlane.f32.xlu1 %v788_v18  ;;  %792 = vmax.xlane.f32.xlu0 %v791_v19 }
 0x2f6   : > { %v732_v20 = vpop.f32.mrf.mxu2  ;;  %v751_v21 = vpop.f32.mrf.mxu3 }
 0x34c   : > { %v787_v24 = vpop.xlane.xlu2 %786 }
 0x34d   : > { %v797_v25 = vsub.f32 %v781_v3, %v787_v24 }
 0x34f   : > { %v801_v26 = vmul.f32 1.442695, %v797_v25 }
 0x351   : > { %1403 = vpow2.f32 %v801_v26 }
 0x357   : > { %v1404_v27 = vpop.eup %1403 }
 0x358   : > { %v809_v28 = vsel %vm694_vm6, %v1404_v27, 0.0 }
 0x359   : > { %810 = vadd.xlane.f32.xlu0 %v809_v28 }
 0x35c   : > { %v796_v29 = vpop.xlane.xlu0 %795 }
 0x35d   : > { %v800_v32 = vsub.f32 %v784_v9, %v796_v29 }
 0x35f   : > { %v807_v34 = vmul.f32 1.442695, %v800_v32 }
 0x366   : > { %v790_v30 = vpop.xlane.xlu1 %789  ;;  %v793_v35 = vpop.xlane.xlu0 %792 }
 0x367   : > { %v798_v31 = vsub.f32 %v782_v16, %v790_v30  ;;  %v799_v37 = vsub.f32 %v783_v17, %v793_v35  ;;  %v914_v16 = vld [vmem:[%s1790_s4 + $0x4] sm:$0xf] }
 0x368   : > { %v940_v17 = vsel %vm698_vm5, %v914_v16, 0  ;;  %v1397_v16 = vld [vmem:[%s1795_s9] ss:$0 sm:$0xff] }
 0x369   : > { %v803_v33 = vmul.f32 1.442695, %v798_v31  ;;  %v805_v39 = vmul.f32 1.442695, %v799_v37  ;;  %949 = vmatpush.bf16.msrb.mxu1 %v940_v17 }
 0x36b   : > { %1405 = vpow2.f32 %v803_v33 }
 0x36c   : > { %1407 = vpow2.f32 %v807_v34 }
 0x36d   : > { %1409 = vpow2.f32 %v805_v39 }
 0x371   : > { %v1406_v36 = vpop.eup %1405 }
 0x372   : > { %v812_v38 = vsel %vm694_vm6, %v1406_v36, 0.0  ;;  %v1408_v40 = vpop.eup %1407 }
 0x373   : > { %813 = vadd.xlane.f32.xlu0 %v812_v38  ;;  %v818_v41 = vsel %vm694_vm6, %v1408_v40, 0.0  ;;  %v1410_v42 = vpop.eup %1409 }
 0x374   : > { %v815_v43 = vsel %vm694_vm6, %v1410_v42, 0.0 }
 0x37b   : > { %819 = vadd.xlane.f32.xlu0 %v818_v41 }
 0x383   : > { %816 = vadd.xlane.f32.xlu0 %v815_v43  ;;  %v1394_v43 = vld [vmem:[%s1791_s5] ss:$0 sm:$0xff] }
 0x3cc   : > { %v811_v56 = vpop.xlane.xlu0 %810 }
 0x3cd   : > { %1411 = vrcp.f32 %v811_v56 }
 0x3d3   : > { %v1412_v57 = vpop.eup %1411 }
 0x3d4   : > { %v825_v58 = vmul.f32 %v1412_v57, %v1404_v27 }
 0x3d6   : > { %v829_v59 = vpack.c.bf16 %v825_v58, %v825_v58  ;;  %v1342_v58 = vld [vmem:[%s1796_s10 + $0x30] sm:$0xff] }
 0x3d8   : > { %1275 = vmatmul.msk.bf16.vlgmr.msrb.gmra.mxu2 %vm694_vm6, %v829_v59 }
 0x3d9   : > { %968 = vmatpush.bf16.msrb.mxu2 %v959_v14  ;;  %v1337_v14 = vld [vmem:[%s1796_s10 + $0x8] sm:$0xff] }
 0x3e6   : > { %v814_v60 = vpop.xlane.xlu0 %813 }
 0x3e7   : > { %1413 = vrcp.f32 %v814_v60  ;;  %v1341_v60 = vld [vmem:[%s1796_s10 + $0x28] sm:$0xff] }
 0x3ed   : > { %v1414_v61 = vpop.eup %1413 }
 0x3ee   : > { %v826_v62 = vmul.f32 %v1414_v61, %v1406_v36  ;;  %v820_v63 = vpop.xlane.xlu0 %819  ;;  %v1340_v61 = vld [vmem:[%s1796_s10 + $0x20] sm:$0xff] }
 0x3ef   : > { %1415 = vrcp.f32 %v820_v63 }
 0x3f0   : > { %v830_v1 = vpack.c.bf16 %v826_v62, %v826_v62 }
 0x3f2   : > { %1276 = vmatmul.msk.bf16.vlgmr.msrb.gmra.mxu3 %vm694_vm6, %v830_v1 }
 0x3f3   : > { %987 = vmatpush.bf16.msrb.mxu3 %v978_v15  ;;  %v1336_v15 = vld [vmem:[%s1796_s10] sm:$0xff] }
 0x3f5   : > { %v1416_v2 = vpop.eup %1415 }
 0x3f6   : > { %v828_v3 = vmul.f32 %v1416_v2, %v1408_v40  ;;  %v817_v4 = vpop.xlane.xlu0 %816 }
 0x3f7   : > { %1417 = vrcp.f32 %v817_v4 }
 0x3f8   : > { %v832_v5 = vpack.c.bf16 %v828_v3, %v828_v3  ;;  %v1338_v3 = vld [vmem:[%s1796_s10 + $0x10] sm:$0xff] }
 0x3fa   : > { %1278 = vmatmul.msk.bf16.vlgmr.msra.gmra.mxu2 %vm694_vm6, %v832_v5 }
 0x3fb   : > { %1145 = vmatpush.bf16.msra.mxu2 %v1343_v55 }
 0x3fd   : > { %v1418_v6 = vpop.eup %1417 }
 0x3fe   : > { %v827_v7 = vmul.f32 %v1418_v6, %v1410_v42  ;;  %v1395_v6 = vld [vmem:[%s1792_s6] ss:$0 sm:$0xff] }
 0x3ff   : > { %1146 = vmatpush.bf16.msra.mxu2 %v1342_v58 }
 0x400   : > { %v831_v9 = vpack.c.bf16 %v827_v7, %v827_v7 }
 0x402   : > { %1277 = vmatmul.msk.bf16.vlgmr.msra.gmra.mxu1 %vm694_vm6, %v831_v9 }
 0x403   : > { %1147 = vmatpush.bf16.msra.mxu2 %v1341_v60 }
 0x407   : > { %1148 = vmatpush.bf16.msra.mxu2 %v1340_v61 }
 0x45b   : > { %v848_v18 = vpop.f32.mrf.mxu2 }
 0x45c   : > { %v909_v19 = vpack.c.bf16 %v848_v18, %v848_v18 }
 0x45e   : > { %1279 = vmatmul.msk.bf16.vlgmr.msra.gmra.mxu3 %vm694_vm6, %v909_v19 }
 0x463   : > { %v850_v20 = vpop.f32.mrf.mxu2 }
 0x475   : > { %v867_v21 = vpop.f32.mrf.mxu3 }
 0x476   : > { %v910_v22 = vpack.c.bf16 %v867_v21, %v867_v21 }
 0x478   : > { %1280 = vmatmul.msk.bf16.vlgmr.msrb.gmra.mxu1 %vm694_vm6, %v910_v22  ;;  %v1398_v22 = vld [vmem:[%s1797_s11] ss:$0 sm:$0xff] }
 0x47d   : > { %v869_v23 = vpop.f32.mrf.mxu3  ;;  %v905_v24 = vpop.f32.mrf.mxu2 }
 0x47e   : > { %v912_v25 = vpack.c.bf16 %v905_v24, %v905_v24 }
 0x47f   : > { %v886_v26 = vpop.f32.mrf.mxu1 }
 0x480   : > { %v911_v27 = vpack.c.bf16 %v886_v26, %v886_v26  ;;  %1282 = vmatmul.msk.bf16.vlgmr.msrb.gmra.mxu3 %vm694_vm6, %v912_v25 }
 0x482   : > { %1281 = vmatmul.msk.bf16.vlgmr.msrb.gmra.mxu2 %vm694_vm6, %v911_v27 }
 0x485   : > { %v907_v28 = vpop.f32.mrf.mxu2 }
 0x487   : > { %v888_v29 = vpop.f32.mrf.mxu1 }
 0x4e1   : > { %v932_v30 = vpop.f32.mrf.mxu3 }
 0x4e2   : > { %v993_v36 = vsel %vm413_vm0, %v932_v30, 0.0 }
 0x4e9   : > { %v934_v31 = vpop.f32.mrf.mxu3 }
 0x4f5   : > { %v951_v32 = vpop.f32.mrf.mxu1 }
 0x4f6   : > { %v994_v34 = vsel %vm413_vm0, %v951_v32, 0.0 }
 0x4f7   : > { %v995_v37 = vadd.f32 %v994_v34, %v993_v36 }
 0x4fd   : > { %v953_v33 = vpop.f32.mrf.mxu1 }
 0x503   : > { %v989_v35 = vpop.f32.mrf.mxu3 }
 0x504   : > { %v998_v41 = vsel %vm413_vm0, %v989_v35, 0.0 }
 0x505   : > { %v970_v38 = vpop.f32.mrf.mxu2 }
 0x506   : > { %v996_v39 = vsel %vm413_vm0, %v970_v38, 0.0 }
 0x507   : > { %v997_v40 = vadd.f32 %v996_v39, %v995_v37 }
 0x509   : > { %v999_v42 = vadd.f32 %v998_v41, %v997_v40 }
 0x50b   : > { %v1000_v44 = vadd.f32 %v999_v42, %v1604_v0  ;;  %v991_v45 = vpop.f32.mrf.mxu3  ;;  %v1335_v0 = vld [vmem:[%s1794_s8 + $0x8] sm:$0xff] }
 0x50c   : > { %1068 = vmatpush.bf16.msra.mxu1 %v1335_v0 }
 0x50d   : > { %v972_v46 = vpop.f32.mrf.mxu2  ;;  %v1701_v47 = vadd.f32 %v1394_v43, %v1000_v44 }
 0x50f   : > { %v1008_v48 = vsel %vm413_vm0, %v1701_v47, 0.0 }
 0x510   : > { %1009 = vadd.xlane.f32.xlu0 %v1008_v48  ;;  %1069 = vmatpush.bf16.msra.mxu1 %v1334_v54 }
 0x583   : > { %v1010_v49 = vpop.xlane.xlu0 %1009 }
 0x584   : > { %v1011_v50 = vmul.f32 %v1010_v49, %v1608_v8 }
 0x586   : > { %v1012_v51 = vsub.f32 %v1701_v47, %v1011_v50 }
 0x588   : > { %v1013_v52 = vmul.f32 %v1012_v51, %v1012_v51 }
 0x58a   : > { %v1014_v53 = vsel %vm413_vm0, %v1013_v52, 0.0 }
 0x58b   : > { %1015 = vadd.xlane.f32.xlu0 %v1014_v53 }
 0x5fe   : > { %v1016_v56 = vpop.xlane.xlu0 %1015 }
 0x5ff   : > { %v1017_v57 = vmul.f32 %v1016_v56, %v1608_v8  ;;  %v1339_v8 = vld [vmem:[%s1796_s10 + $0x18] sm:$0xff] }
 0x600   : > { %1149 = vmatpush.bf16.msra.mxu2 %v1339_v8 }
 0x601   : > { %v1018_v59 = vadd.f32 1e-05, %v1017_v57 }
 0x603   : > { %1419 = vrsqrt.f32 %v1018_v59  ;;  %vm1025_vm9 = vweird.f32 %v1018_v59 }
 0x604   : > { %1150 = vmatpush.bf16.msra.mxu2 %v1338_v3 }
 0x608   : > { %1151 = vmatpush.bf16.msra.mxu2 %v1337_v14 }
 0x609   : > { %v1420_v62 = vpop.eup %1419 }
 0x60a   : > { %v1020_v63 = vmul.f32 %v1420_v62, %v1018_v59  ;;  %vm1026_vm8 = vweird.f32 %v1420_v62 }
 0x60b   : > { %vm1027_vm10 = vmor %vm1025_vm9, %vm1026_vm8 }
 0x60c   : > { %v1021_v1 = vmul.f32 %v1420_v62, %v1020_v63  ;;  %1152 = vmatpush.bf16.msra.mxu2 %v1336_v15 }
 0x60e   : > { %v1022_v2 = vmul.f32 0.5, %v1021_v1 }
 0x610   : > { %v1023_v4 = vsub.f32 1.5, %v1022_v2 }
 0x612   : > { %v1024_v5 = vmul.f32 %v1420_v62, %v1023_v4 }
 0x614   : > { %v1028_v7 = vsel %vm1027_vm10, %v1420_v62, %v1024_v5 }
 0x615   : > { %v1029_v9 = vmul.f32 %v1028_v7, %v1012_v51 }
 0x617   : > { %v1033_v11 = vmul.f32 %v1395_v6, %v1029_v9 }
 0x619   : > { %v1037_v12 = vadd.f32 %v1396_v10, %v1033_v11 }
 0x61b   : > { %v1038_v13 = vpack.c.bf16 %v1037_v12, %v1037_v12 }
 0x61d   : > { %1291 = vmatmul.msk.bf16.vlgmr.msra.gmra.mxu1 %vm413_vm0, %v1038_v13 }
 0x69a   : > { %v1071_v17 = vpop.f32.mrf.mxu1 }
 0x69b   : > { %v1072_v18 = vadd.f32 %v1397_v16, %v1071_v17 }
 0x69d   : > { %v1075_v19 = vmax.f32 %v1072_v18, 0.0 }
 0x69f   : > { %v1076_v20 = vpack.c.bf16 %v1075_v19, %v1075_v19 }
 0x6a1   : > { %1153 = vmatmul.bf16.vlgmr.msra.gmra.mxu2 %v1076_v20 }
 0x6a2   : > { %v1073_v21 = vpop.f32.mrf.mxu1 }
 0x724   : > { %v1154_v23 = vpop.f32.mrf.mxu2 }
 0x725   : > { %v1155_v24 = vadd.f32 %v1398_v22, %v1154_v23 }
 0x727   : > { %v1158_v25 = vadd.f32 %v1155_v24, %v1701_v47 }
 0x729   : > { %1159 = vst.msk [vmem:[%s404_s16] sm:$0xff] %vm413_vm0, %v1158_v25 }
 0x72a   : > { %1448 = shalt.err (!%p1445_p3)
}
 0x72b   : > { %1344 = dma.vmem_to_hbm [thread:$0]  (%p1589_p5), %s1174_s17, 128, %s1176_s1, %s1161_s25  }
 0x72c   : > { %v1156_v26 = vpop.f32.mrf.mxu2 }
 0x72d PF: > { %p1350_p4 = scmp.ge.s32.totalorder %s1483_s24, 2  ;;  %s1187_s18 = sand.u32 1, %s1471_s21  }
 0x72e   : > { %s1188_s15 = scalar_lea.sflag [#allocation3], %s1187_s18 }
 0x72f   : > { %p1347_p7 = pnand %p1350_p4, %p1593_p6 }
 0x731   : > { %p1348_p8 = pneg %p1347_p7 }
 0x733   : > { %1466 = dma.done.wait (%p1348_p8), %s1188_s15, 128  }
 0x734   : > { %1468 = vsyncadd (%p1348_p8), %s1188_s15, 4294967168  ;;  %p22_p9 = scmp.ge.s32.totalorder %s1576_s27, 4   ;;  %s1807_s21 = smov %s1475_s22 }
 0x735   : > { %s1808_s22 = smov %s1479_s23  ;;  %s1809_s23 = smov %s1587_s30 }
 0x736   : > { %s1810_s24 = smov %s1576_s27  ;;  %24 = sbr.rel (!%p22_p9) target bundleno = 7 (0x7), region = 103 }
 0x73b   :  { %1194 = vsyncpa [#allocation3], 1 }
 0x73c   :  { %1196 = vsyncpa [#allocation3 + $0x1], 1 }

</bundles_post_ra>
